<compile_context>
chip_gen: v7x
topology: tpu7x:2x2x1
jax: 0.10.0
libtpu: 0.0.40
codegen_flags: <defaults>
</compile_context>

<pallas_src>
import jax
import jax.numpy as jnp
from jax.experimental import pallas as pl
from jax.experimental.pallas import tpu as pltpu


def _se_block_kernel(x1_ref, x2_ref, w1_ref, w2_ref,
                     pool_ref, unpool_ref, sel1_ref, sel2_ref, o_ref):
    # x1_ref/x2_ref: (R, HW)   R = TB*C0 rows (batch-major) of each modality
    # w1_ref: (C, Cmid), w2_ref: (Cmid, C)  excitation linears (no bias, pre-transposed)
    # pool_ref:   (TB, R)  = indicator(row belongs to batch) / HW   (folds the mean)
    # unpool_ref: (R, TB)  = indicator(row belongs to batch)
    # sel1_ref:   (R, C)   one-hot: channel index of the row within modality 1
    # sel2_ref:   (R, C)   one-hot: channel index of the row within modality 2
    # o_ref:      (R, HW)  SE-scaled, chunk-summed output
    x1 = x1_ref[...]                                   # (R, HW) f32
    x2 = x2_ref[...]

    # --- squeeze: per-row spatial sum (the 1/HW of the mean lives in pool_ref) ---
    s1 = jnp.sum(x1, axis=-1, keepdims=True)           # (R, 1)
    s2 = jnp.sum(x2, axis=-1, keepdims=True)           # (R, 1)

    sel1 = sel1_ref[...]                               # (R, C)
    sel2 = sel2_ref[...]                               # (R, C)

    # gather row sums into excitation space: theta[b, c] = mean over HW of channel c
    theta = jnp.dot(pool_ref[...], s1 * sel1 + s2 * sel2,
                    preferred_element_type=jnp.float32)            # (TB, C)

    # --- excitation: Linear -> ReLU -> Linear -> Sigmoid ---
    h = jnp.maximum(jnp.dot(theta, w1_ref[...],
                            preferred_element_type=jnp.float32), 0.0)   # (TB, Cmid)
    t = jax.nn.sigmoid(jnp.dot(h, w2_ref[...],
                               preferred_element_type=jnp.float32))     # (TB, C)

    # scatter gates back to one scale per row, per modality
    tr = jnp.dot(unpool_ref[...], t, preferred_element_type=jnp.float32)  # (R, C)
    g1 = jnp.sum(tr * sel1, axis=-1, keepdims=True)    # (R, 1)
    g2 = jnp.sum(tr * sel2, axis=-1, keepdims=True)    # (R, 1)

    # --- scale and fused chunk-sum of the two modalities ---
    o_ref[...] = x1 * g1 + x2 * g2


def _choose_tb(b, c0, hw, itemsize=4, vmem_budget_bytes=24 * 1024 * 1024):
    """Batch elements per grid step: sublane-dense rows, VMEM sized for v7x (64 MiB
    physical), and >=2 grid steps when possible so both v7x TensorCores get work."""
    def fits(tb):
        # x1, x2, out blocks, each double-buffered by the Pallas pipeline.
        return 6 * tb * c0 * hw * itemsize <= vmem_budget_bytes

    divisors = [tb for tb in range(1, b + 1) if b % tb == 0]
    # rows per block must be a multiple of 8 (or the full extent) for unmasked stores
    ok = [tb for tb in divisors if (tb * c0) % 8 == 0 or tb == b]
    ok = [tb for tb in ok if fits(tb)] or [tb for tb in divisors if fits(tb)] or [1]
    multi = [tb for tb in ok if b // tb >= 2]
    return max(multi) if multi else min(ok)


def se_block(modality1, modality2, w1, w2):
    """SEBlock forward for the two-modality path.

    modality1, modality2: (B, C0, H, W) float32 (NCHW, like PyTorch)
    w1: (C, Cmid), w2: (Cmid, C) with C = 2*C0  (Linear weights pre-transposed so the
        kernel does y = x @ w, matching torch's y = x @ W.T)
    returns: (B, C0, H, W)
    """
    b, c0, hh, ww = modality1.shape
    c = 2 * c0
    hw = hh * ww
    cmid = w1.shape[1]
    assert w1.shape == (c, cmid) and w2.shape == (cmid, c)

    # Free, contiguous row-flattened views (no concat, no copies).
    x1 = modality1.reshape(b * c0, hw)
    x2 = modality2.reshape(b * c0, hw)
    itemsize = x1.dtype.itemsize

    tb = _choose_tb(b, c0, hw, itemsize=itemsize)
    r_blk = tb * c0
    n_steps = b // tb

    # Tiny constant gather/scatter matrices, built once in the wrapper.
    row = jnp.arange(r_blk)
    batch_of_row = row // c0
    chan_of_row = row % c0
    pool = (jnp.arange(tb)[:, None] == batch_of_row[None, :]).astype(jnp.float32) / float(hw)
    unpool = (batch_of_row[:, None] == jnp.arange(tb)[None, :]).astype(jnp.float32)
    sel1 = (chan_of_row[:, None] == jnp.arange(c)[None, :]).astype(jnp.float32)
    sel2 = ((chan_of_row + c0)[:, None] == jnp.arange(c)[None, :]).astype(jnp.float32)

    aux_bytes = 4 * (w1.size + w2.size + pool.size + unpool.size + sel1.size + sel2.size)
    data_bytes = 3 * b * c0 * hw * itemsize
    cost = pl.CostEstimate(
        flops=int(4 * b * c * cmid + 5 * b * c0 * hw + 4 * b * r_blk * c),
        transcendentals=int(b * c),
        bytes_accessed=int(data_bytes + aux_bytes),
    )

    step_vmem = 6 * r_blk * hw * itemsize + 2 * aux_bytes
    vmem_limit = int(min(48 * 1024 * 1024,
                         max(step_vmem + (2 << 20), 16 * 1024 * 1024)))

    def _full_spec(arr):
        return pl.BlockSpec(arr.shape, lambda i: (0, 0))

    out = pl.pallas_call(
        _se_block_kernel,
        out_shape=jax.ShapeDtypeStruct((b * c0, hw), jnp.float32),
        grid_spec=pltpu.PrefetchScalarGridSpec(
            num_scalar_prefetch=0,
            grid=(n_steps,),
            in_specs=[
                pl.BlockSpec((r_blk, hw), lambda i: (i, 0)),   # modality 1 rows
                pl.BlockSpec((r_blk, hw), lambda i: (i, 0)),   # modality 2 rows
                _full_spec(w1), _full_spec(w2),
                _full_spec(pool), _full_spec(unpool),
                _full_spec(sel1), _full_spec(sel2),
            ],
            out_specs=pl.BlockSpec((r_blk, hw), lambda i: (i, 0)),
        ),
        compiler_params=pltpu.CompilerParams(
            dimension_semantics=("parallel",),
            vmem_limit_bytes=vmem_limit,
        ),
        cost_estimate=cost,
    )(x1, x2, w1, w2, pool, unpool, sel1, sel2)

    return out.reshape(b, c0, hh, ww)


def se_block_ref(modality1, modality2, w1, w2):
    """Pure-JAX reference mirroring the PyTorch forward."""
    x = jnp.concatenate([modality1, modality2], axis=1)       # (B, C, H, W)
    theta = jnp.mean(x, axis=(2, 3))                          # (B, C)
    h = jnp.maximum(theta @ w1, 0.0)
    t = jax.nn.sigmoid(h @ w2)                                # (B, C)
    x = x * t[:, :, None, None]
    m1, m2 = jnp.split(x, 2, axis=1)
    return m1 + m2


if __name__ == "__main__":
    key = jax.random.PRNGKey(0)
    k1, k2, k3, k4 = jax.random.split(key, 4)

    # Two modalities, each (B=2, C0=4, H=16, W=16) -> concat channels C=8.
    B, C0, H, W = 2, 4, 16, 16
    C = 2 * C0
    RATIO = 16
    # in_channels (=8) < r (=16) -> hidden = in_channels * r = 128
    CMID = C * RATIO

    modality1 = jax.random.normal(k1, (B, C0, H, W), dtype=jnp.float32)
    modality2 = jax.random.normal(k2, (B, C0, H, W), dtype=jnp.float32)

    # Deterministic synthetic Linear weights (bias=False in the module),
    # stored pre-transposed: y = x @ w  (torch: y = x @ W.T).
    w1 = jax.random.normal(k3, (C, CMID), dtype=jnp.float32) * (1.0 / C ** 0.5)
    w2 = jax.random.normal(k4, (CMID, C), dtype=jnp.float32) * (1.0 / CMID ** 0.5)

    out = se_block(modality1, modality2, w1, w2)
    jax.block_until_ready(out)

    ref = se_block_ref(modality1, modality2, w1, w2)
    assert out.shape == (B, C0, H, W)
    assert jnp.allclose(out, ref, atol=1e-5, rtol=1e-5), "mismatch vs reference"

    print("KERNEL_OK")
</pallas_src>

<mosaic_0001>
module attributes {stable_mosaic.version = 11 : i64} {
  func.func @_se_block_kernel(%arg0: i32, %arg1: memref<8x256xf32, #tpu.memory_space<vmem>>, %arg2: memref<8x256xf32, #tpu.memory_space<vmem>>, %arg3: memref<8x128xf32, #tpu.memory_space<vmem>>, %arg4: memref<128x8xf32, #tpu.memory_space<vmem>>, %arg5: memref<2x8xf32, #tpu.memory_space<vmem>>, %arg6: memref<8x2xf32, #tpu.memory_space<vmem>>, %arg7: memref<8x8xf32, #tpu.memory_space<vmem>>, %arg8: memref<8x8xf32, #tpu.memory_space<vmem>>, %arg9: memref<8x256xf32, #tpu.memory_space<vmem>>) attributes {dimension_semantics = [#tpu.dimension_semantics<parallel>], iteration_bounds = array<i64: 1>, scalar_prefetch = 0 : i64, scratch_operands = 0 : i64, tpu.core_type = #tpu.core_type<tc>, window_params = [{transform_indices = @transform_0, window_bounds = array<i64: 8, 256>}, {transform_indices = @transform_1, window_bounds = array<i64: 8, 256>}, {pipeline_mode = #tpu.pipeline_mode<synchronous>, transform_indices = @transform_2, window_bounds = array<i64: 8, 128>}, {pipeline_mode = #tpu.pipeline_mode<synchronous>, transform_indices = @transform_3, window_bounds = array<i64: 128, 8>}, {pipeline_mode = #tpu.pipeline_mode<synchronous>, transform_indices = @transform_4, window_bounds = array<i64: 2, 8>}, {pipeline_mode = #tpu.pipeline_mode<synchronous>, transform_indices = @transform_5, window_bounds = array<i64: 8, 2>}, {pipeline_mode = #tpu.pipeline_mode<synchronous>, transform_indices = @transform_6, window_bounds = array<i64: 8, 8>}, {pipeline_mode = #tpu.pipeline_mode<synchronous>, transform_indices = @transform_7, window_bounds = array<i64: 8, 8>}, {transform_indices = @transform_8, window_bounds = array<i64: 8, 256>}]} {
    %c0 = arith.constant 0 : index
    %c0_0 = arith.constant 0 : index
    %0 = vector.load %arg1[%c0, %c0_0] : memref<8x256xf32, #tpu.memory_space<vmem>>, vector<8x256xf32>
    %c0_1 = arith.constant 0 : index
    %c0_2 = arith.constant 0 : index
    %1 = vector.load %arg2[%c0_1, %c0_2] : memref<8x256xf32, #tpu.memory_space<vmem>>, vector<8x256xf32>
    %cst = arith.constant dense<0.000000e+00> : vector<8xf32>
    %2 = vector.multi_reduction <add>, %0, %cst [1] : vector<8x256xf32> to vector<8xf32>
    %3 = vector.shape_cast %2 : vector<8xf32> to vector<8x1xf32>
    %cst_3 = arith.constant dense<0.000000e+00> : vector<8xf32>
    %4 = vector.multi_reduction <add>, %1, %cst_3 [1] : vector<8x256xf32> to vector<8xf32>
    %5 = vector.shape_cast %4 : vector<8xf32> to vector<8x1xf32>
    %c0_4 = arith.constant 0 : index
    %c0_5 = arith.constant 0 : index
    %6 = vector.load %arg7[%c0_4, %c0_5] : memref<8x8xf32, #tpu.memory_space<vmem>>, vector<8x8xf32>
    %c0_6 = arith.constant 0 : index
    %c0_7 = arith.constant 0 : index
    %7 = vector.load %arg8[%c0_6, %c0_7] : memref<8x8xf32, #tpu.memory_space<vmem>>, vector<8x8xf32>
    %c0_8 = arith.constant 0 : index
    %c0_9 = arith.constant 0 : index
    %8 = vector.load %arg5[%c0_8, %c0_9] : memref<2x8xf32, #tpu.memory_space<vmem>>, vector<2x8xf32>
    %9 = vector.broadcast %3 : vector<8x1xf32> to vector<8x8xf32>
    %10 = arith.mulf %9, %6 : vector<8x8xf32>
    %11 = vector.broadcast %5 : vector<8x1xf32> to vector<8x8xf32>
    %12 = arith.mulf %11, %7 : vector<8x8xf32>
    %13 = arith.addf %10, %12 : vector<8x8xf32>
    %cst_10 = arith.constant dense<0.000000e+00> : vector<2x8xf32>
    %14 = tpu.matmul %8, %13, %cst_10 {dimension_numbers = #tpu.dot_dimension_numbers<[1], [0], [0], [1], [0, 0, 1, 1], [], []>} : vector<2x8xf32>, vector<8x8xf32>, vector<2x8xf32> -> vector<2x8xf32>
    %c0_11 = arith.constant 0 : index
    %c0_12 = arith.constant 0 : index
    %15 = vector.load %arg3[%c0_11, %c0_12] : memref<8x128xf32, #tpu.memory_space<vmem>>, vector<8x128xf32>
    %cst_13 = arith.constant dense<0.000000e+00> : vector<2x128xf32>
    %16 = tpu.matmul %14, %15, %cst_13 {dimension_numbers = #tpu.dot_dimension_numbers<[1], [0], [0], [1], [0, 0, 1, 1], [], []>} : vector<2x8xf32>, vector<8x128xf32>, vector<2x128xf32> -> vector<2x128xf32>
    %cst_14 = arith.constant 0.000000e+00 : f32
    %17 = vector.broadcast %cst_14 : f32 to vector<2x128xf32>
    %18 = arith.maximumf %16, %17 : vector<2x128xf32>
    %c0_15 = arith.constant 0 : index
    %c0_16 = arith.constant 0 : index
    %19 = vector.load %arg4[%c0_15, %c0_16] : memref<128x8xf32, #tpu.memory_space<vmem>>, vector<128x8xf32>
    %cst_17 = arith.constant dense<0.000000e+00> : vector<2x8xf32>
    %20 = tpu.matmul %18, %19, %cst_17 {dimension_numbers = #tpu.dot_dimension_numbers<[1], [0], [0], [1], [0, 0, 1, 1], [], []>} : vector<2x128xf32>, vector<128x8xf32>, vector<2x8xf32> -> vector<2x8xf32>
    %21 = arith.negf %20 : vector<2x8xf32>
    %22 = math.exp %21 : vector<2x8xf32>
    %cst_18 = arith.constant 1.000000e+00 : f32
    %23 = vector.broadcast %cst_18 : f32 to vector<2x8xf32>
    %24 = arith.addf %23, %22 : vector<2x8xf32>
    %25 = arith.divf %23, %24 : vector<2x8xf32>
    %c0_19 = arith.constant 0 : index
    %c0_20 = arith.constant 0 : index
    %26 = vector.load %arg6[%c0_19, %c0_20] : memref<8x2xf32, #tpu.memory_space<vmem>>, vector<8x2xf32>
    %cst_21 = arith.constant dense<0.000000e+00> : vector<8x8xf32>
    %27 = tpu.matmul %26, %25, %cst_21 {dimension_numbers = #tpu.dot_dimension_numbers<[1], [0], [0], [1], [0, 0, 1, 1], [], []>} : vector<8x2xf32>, vector<2x8xf32>, vector<8x8xf32> -> vector<8x8xf32>
    %28 = arith.mulf %27, %6 : vector<8x8xf32>
    %cst_22 = arith.constant dense<0.000000e+00> : vector<8xf32>
    %29 = vector.multi_reduction <add>, %28, %cst_22 [1] : vector<8x8xf32> to vector<8xf32>
    %30 = vector.shape_cast %29 : vector<8xf32> to vector<8x1xf32>
    %31 = arith.mulf %27, %7 : vector<8x8xf32>
    %cst_23 = arith.constant dense<0.000000e+00> : vector<8xf32>
    %32 = vector.multi_reduction <add>, %31, %cst_23 [1] : vector<8x8xf32> to vector<8xf32>
    %33 = vector.shape_cast %32 : vector<8xf32> to vector<8x1xf32>
    %34 = vector.broadcast %30 : vector<8x1xf32> to vector<8x256xf32>
    %35 = arith.mulf %0, %34 : vector<8x256xf32>
    %36 = vector.broadcast %33 : vector<8x1xf32> to vector<8x256xf32>
    %37 = arith.mulf %1, %36 : vector<8x256xf32>
    %38 = arith.addf %35, %37 : vector<8x256xf32>
    %c0_24 = arith.constant 0 : index
    %c0_25 = arith.constant 0 : index
    %39 = vector.load %arg9[%c0_24, %c0_25] : memref<8x256xf32, #tpu.memory_space<vmem>>, vector<8x256xf32>
    tpu.vector_store %arg9[%c0_24, %c0_25], %38 {strides = array<i32>} : memref<8x256xf32, #tpu.memory_space<vmem>>, vector<8x256xf32>,
    return
  }
  func.func @transform_0(%arg0: i32) -> (i32, i32) {
    %c0_i32 = arith.constant 0 : i32
    %c0_i32_0 = arith.constant 0 : i32
    return %arg0, %c0_i32 : i32, i32
  }
  func.func @transform_1(%arg0: i32) -> (i32, i32) {
    %c0_i32 = arith.constant 0 : i32
    %c0_i32_0 = arith.constant 0 : i32
    return %arg0, %c0_i32 : i32, i32
  }
  func.func @transform_2(%arg0: i32) -> (i32, i32) {
    %c0_i32 = arith.constant 0 : i32
    %c0_i32_0 = arith.constant 0 : i32
    %c0_i32_1 = arith.constant 0 : i32
    return %c0_i32, %c0_i32_0 : i32, i32
  }
  func.func @transform_3(%arg0: i32) -> (i32, i32) {
    %c0_i32 = arith.constant 0 : i32
    %c0_i32_0 = arith.constant 0 : i32
    %c0_i32_1 = arith.constant 0 : i32
    return %c0_i32, %c0_i32_0 : i32, i32
  }
  func.func @transform_4(%arg0: i32) -> (i32, i32) {
    %c0_i32 = arith.constant 0 : i32
    %c0_i32_0 = arith.constant 0 : i32
    %c0_i32_1 = arith.constant 0 : i32
    return %c0_i32, %c0_i32_0 : i32, i32
  }
  func.func @transform_5(%arg0: i32) -> (i32, i32) {
    %c0_i32 = arith.constant 0 : i32
    %c0_i32_0 = arith.constant 0 : i32
    %c0_i32_1 = arith.constant 0 : i32
    return %c0_i32, %c0_i32_0 : i32, i32
  }
  func.func @transform_6(%arg0: i32) -> (i32, i32) {
    %c0_i32 = arith.constant 0 : i32
    %c0_i32_0 = arith.constant 0 : i32
    %c0_i32_1 = arith.constant 0 : i32
    return %c0_i32, %c0_i32_0 : i32, i32
  }
  func.func @transform_7(%arg0: i32) -> (i32, i32) {
    %c0_i32 = arith.constant 0 : i32
    %c0_i32_0 = arith.constant 0 : i32
    %c0_i32_1 = arith.constant 0 : i32
    return %c0_i32, %c0_i32_0 : i32, i32
  }
  func.func @transform_8(%arg0: i32) -> (i32, i32) {
    %c0_i32 = arith.constant 0 : i32
    %c0_i32_0 = arith.constant 0 : i32
    return %arg0, %c0_i32 : i32, i32
  }
}

</mosaic_0001>

<bundles_post_ra>
// kernel: tpu_custom_call.1
= control target key start
LH: loop header
LB: loop body
LE: loop exit
PB: predicated region body
PF: predicated region fallthrough
CT: control target
= control target key end

     0   :  { %s698_s0 = inlined_call_operand.vmem [shape: f32[8,256], index: 0, kind: input, shape index: {}]   ;;  %s699_s1 = inlined_call_operand.vmem [shape: f32[8,256], index: 1, kind: input, shape index: {}]   ;;  %s700_s2 = inlined_call_operand.vmem [shape: f32[8,128], index: 2, kind: input, shape index: {}]   ;;  %s701_s3 = inlined_call_operand.vmem [shape: f32[128,8], index: 3, kind: input, shape index: {}]   ;;  %s702_s4 = inlined_call_operand.vmem [shape: f32[2,8], index: 4, kind: input, shape index: {}]   ;;  %s703_s5 = inlined_call_operand.vmem [shape: f32[8,2], index: 5, kind: input, shape index: {}]   ;;  %s704_s6 = inlined_call_operand.vmem [shape: f32[8,8], index: 6, kind: input, shape index: {}]   ;;  %s705_s7 = inlined_call_operand.vmem [shape: f32[8,8], index: 7, kind: input, shape index: {}]   ;;  %s706_s8 = inlined_call_operand.hbm [shape: f32[8,256], index: 8, kind: output, shape index: {}]  }
   0x1   :  { %v582_v0 = vld [vmem:[%s698_s0] sm:$0xff]  ;;  %v587_v1 = vld [vmem:[%s698_s0 + $0x8] sm:$0xff] }
   0x2   :  { %v592_v2 = vld [vmem:[%s699_s1] sm:$0xff]  ;;  %v34_v3 = vadd.f32 %v587_v1, %v582_v0  ;;  %v599_v4 = vld [vmem:[%s699_s1 + $0x8] sm:$0xff] }
   0x3   :  { %13 = vsyncpa [#allocation3], 0  ;;  %v37_v5 = vadd.f32 %v599_v4, %v592_v2  ;;  %v530_v6 = vmov 0.0   ;;  %vm531_vm0 = vmmov 0   ;;  %v608_v8 = vld [vmem:[%s704_s6] sm:$0xff]  ;;  %vm46_vm1 = vcmask 64512  }
   0x4   :  { %35 = vadd.xlane.f32.xlu0 %v34_v3  ;;  %424 = vmatprep.subr.mxu1 %v530_v6  ;;  %v613_v9 = vld [vmem:[%s705_s7] sm:$0xff]  ;;  %v196_v17 = vld [vmem:[%s701_s3 + $0x8] sm:$0xff]  ;;  %v197_v18 = vld [vmem:[%s701_s3 + $0x10] sm:$0xff]  ;;  %v532_v19 = vmov 0.0|0.0   ;;  %vm292_vm2 = vcmask 1041408   ;;  %vm288_vm3 = vcmask 15360  }
   0x5   :  { %426 = vmatprep.mubr.msk.f32.mxu1 %vm531_vm0, %v530_v6  ;;  %466 = vmatprep.mubr.msk.f32.mxu0 %vm531_vm0, %v530_v6  ;;  %v42_v14 = vld [vmem:[%s702_s4] sm:$0x3]  ;;  %v198_v21 = vld [vmem:[%s701_s3 + $0x18] sm:$0xff]  ;;  %v200_v24 = vld [vmem:[%s701_s3 + $0x28] sm:$0xff] }
   0x6   :  { %v120_v15 = vld [vmem:[%s700_s2] sm:$0xff]  ;;  %474 = vmatprep.subr.bf16.mxu0 %v532_v19  ;;  %v478_v22 = vpack.c.bf16 %v198_v21, %v197_v18  ;;  %v201_v26 = vld [vmem:[%s701_s3 + $0x30] sm:$0xff]  ;;  %v202_v27 = vld [vmem:[%s701_s3 + $0x38] sm:$0xff] }
   0x7   :  { %v195_v16 = vld [vmem:[%s701_s3] sm:$0xff]  ;;  %v484_v28 = vpack.c.bf16 %v202_v27, %v201_v26  ;;  %v204_v30 = vld [vmem:[%s701_s3 + $0x48] sm:$0xff]  ;;  %v205_v32 = vld [vmem:[%s701_s3 + $0x50] sm:$0xff] }
   0x8   :  { %38 = vadd.xlane.f32.xlu0 %v37_v5  ;;  %v475_v20 = vpack.c.bf16 %v196_v17, %v195_v16  ;;  %v199_v23 = vld [vmem:[%s701_s3 + $0x20] sm:$0xff]  ;;  %v206_v33 = vld [vmem:[%s701_s3 + $0x58] sm:$0xff]  ;;  %v208_v36 = vld [vmem:[%s701_s3 + $0x68] sm:$0xff] }
   0x9   :  { %v481_v25 = vpack.c.bf16 %v200_v24, %v199_v23  ;;  %v203_v29 = vld [vmem:[%s701_s3 + $0x40] sm:$0xff]  ;;  %v490_v34 = vpack.c.bf16 %v206_v33, %v205_v32  ;;  %v209_v40 = vld [vmem:[%s701_s3 + $0x70] sm:$0xff]  ;;  %v210_v41 = vld [vmem:[%s701_s3 + $0x78] sm:$0xff] }
   0xa   :  { %476 = vmatpush3.bf16.msra.mxu0 %v475_v20  ;;  %v487_v31 = vpack.c.bf16 %v204_v30, %v203_v29  ;;  %v207_v35 = vld [vmem:[%s701_s3 + $0x60] sm:$0xff]  ;;  %v496_v42 = vpack.c.bf16 %v210_v41, %v209_v40  ;;  %s533_s3 = smov [#allocation2]  }
   0xb   :  { %477 = vmatprep.subr.bf16.mxu0 %v532_v19  ;;  %v493_v37 = vpack.c.bf16 %v208_v36, %v207_v35  ;;  %v287_v51 = vld [vmem:[%s703_s5] sm:$0xff]  ;;  %s388_s5 = sshll.u32 %s533_s3, 4  ;;  %s389_s5 = int_to_ptr.vmem [resolvable:$true] %s388_s5 }
   0xc   :  { %s506_s22 = scalar_lea.vmem %s389_s5, 256  ;;  %p511_p1 = scmp.lt.s32.totalorder %s389_s5, %s389_s5 }
   0xd   :  { %p507_p0 = scmp.ne.s32.totalorder %s389_s5, %s506_s22  ;;  %p512_p2 = scmp.lt.s32.totalorder %s506_s22, %s506_s22 }
   0xe   :  { %479 = vmatpush3.bf16.msra.mxu0 %v478_v22 }
   0xf   :  { %480 = vmatprep.subr.bf16.mxu0 %v532_v19  ;;  %p513_p3 = por %p512_p2, %p511_p1 }
  0x11   :  { %p514_p4 = pnand %p513_p3, %p507_p0 }
  0x12   :  { %482 = vmatpush3.bf16.msra.mxu0 %v481_v25 }
  0x13   :  { %483 = vmatprep.subr.bf16.mxu0 %v532_v19 }
  0x16   :  { %485 = vmatpush3.bf16.msra.mxu0 %v484_v28 }
  0x17   :  { %486 = vmatprep.subr.bf16.mxu0 %v532_v19 }
  0x1a   :  { %488 = vmatpush3.bf16.msra.mxu0 %v487_v31 }
  0x1b   :  { %489 = vmatprep.subr.bf16.mxu0 %v532_v19 }
  0x1e   :  { %491 = vmatpush3.bf16.msra.mxu0 %v490_v34 }
  0x1f   :  { %492 = vmatprep.subr.bf16.mxu0 %v532_v19 }
  0x22   :  { %494 = vmatpush3.bf16.msra.mxu0 %v493_v37 }
  0x23   :  { %495 = vmatprep.subr.bf16.mxu0 %v532_v19 }
  0x26   :  { %497 = vmatpush3.bf16.msra.mxu0 %v496_v42 }
  0x91   :  { %v36_v7 = vpop.xlane.xlu0 %35 }
  0x92   :  { %v43_v11 = vmul.f32 %v608_v8, %v36_v7 }
  0x95   :  { %v39_v10 = vpop.xlane.xlu0 %38 }
  0x96   :  { %v44_v12 = vmul.f32 %v613_v9, %v39_v10 }
  0x98   :  { %v45_v13 = vadd.f32 %v44_v12, %v43_v11 }
  0x9a   :  { %425 = vmatpush3.msra.mxu1 %v45_v13 }
  0x9b   :  { %427 = vmatmul.mubr.msk.f32.vlgmr.msra.gmra.mrb[0].mxu1 %vm46_vm1, %v42_v14  ;;  %429 = vmatprep.subr.mxu1 %v530_v6 }
  0x9c   :  { %431 = vmatprep.mubr.msk.f32.mxu1 %vm531_vm0, %v530_v6  ;;  %430 = vmatpush3.msra.mxu1 %v120_v15 }
  0x9d   :  { %469 = vmatprep.subr.mxu1 %v530_v6 }
 0x16e   :  { %v116_v38 = vpop.f32.mrb[0].mxu1 }
 0x16f   :  { %v428_v39 = vpop.f32.mrb[1].mxu1  ;;  %432 = vmatmul.mubr.msk.f32.vlgmr.msra.gmra.mrb[2].mxu1 %vm46_vm1, %v116_v38 }
 0x170   :  { %471 = vmatprep.mubr.msk.f32.mxu1 %vm531_vm0, %v530_v6 }
 0x242   :  { %v190_v43 = vpop.f32.mrb[2].mxu1 }
 0x243   :  { %v194_v44 = vmax.f32 %v190_v43, 0.0  ;;  %v433_v45 = vpop.f32.mrb[3].mxu1 }
 0x245   :  { %467 = vmatmul.mubr.f32.vlgmr.msra.gmra.mrb[0].mxu0 %v194_v44 }
 0x318   :  { %v277_v46 = vpop.f32.mrb[0].mxu0 }
 0x319   :  { %v398_v47 = vmul.f32 -1.442695, %v277_v46  ;;  %v468_v48 = vpop.f32.mrb[1].mxu0 }
 0x31b   :  { %502 = vpow2.f32 %v398_v47 }
 0x325   :  { %v503_v49 = vpop.eup %502 }
 0x326   :  { %v284_v50 = vadd.f32 1.0, %v503_v49 }
 0x328   :  { %504 = vrcp.f32 %v284_v50 }
 0x332   :  { %v505_v52 = vpop.eup %504 }
 0x333   :  { %470 = vmatpush3.msk.msra.mxu1 %vm292_vm2, %v505_v52 }
 0x334   :  { %472 = vmatmul.mubr.msk.f32.vlgmr.msra.gmra.mrb[4].mxu1 %vm288_vm3, %v287_v51 }
 0x407   :  { %v362_v53 = vpop.f32.mrb[4].mxu1 }
 0x408   :  { %v473_v54 = vpop.f32.mrb[5].mxu1  ;;  %v366_v55 = vmul.f32 %v362_v53, %v608_v8  ;;  %v370_v56 = vmul.f32 %v362_v53, %v613_v9 }
 0x40a   :  { %v367_v57 = vsel %vm46_vm1, %v366_v55, 0.0  ;;  %v371_v58 = vsel %vm46_vm1, %v370_v56, 0.0 }
 0x40b   :  { %368 = vadd.xlane.f32.xlu1 %v367_v57 }
 0x40f   :  { %372 = vadd.xlane.f32.xlu1 %v371_v58 }
 0x498   :  { %v369_v59 = vpop.xlane.xlu1 %368 }
 0x499   :  { %v374_v61 = vmul.f32 %v369_v59, %v582_v0  ;;  %v375_v62 = vmul.f32 %v369_v59, %v587_v1 }
 0x49c   :  { %v373_v60 = vpop.xlane.xlu1 %372 }
 0x49d   :  { %v376_v63 = vmul.f32 %v373_v60, %v592_v2  ;;  %v377_v3 = vmul.f32 %v373_v60, %v599_v4 }
 0x49f   :  { %v378_v5 = vadd.f32 %v376_v63, %v374_v61  ;;  %v379_v6 = vadd.f32 %v377_v3, %v375_v62 }
 0x4a1   :  { %380 = vst [vmem:[#allocation2] sm:$0xff] %v378_v5  ;;  %381 = vst [vmem:[#allocation2 + $0x8] sm:$0xff] %v379_v6 }
 0x4a2   :  { %517 = shalt.err (!%p514_p4)
}
 0x4a3   :  { %s518_s24 = scalar_lea.hbm %s706_s8, 256 }
 0x4a4   :  { %p519_p5 = scmp.ne.s32.totalorder %s706_s8, %s518_s24  ;;  %p522_p6 = scmp.lt.u32.totalorder %s518_s24, %s706_s8 }
 0x4a6   :  { %p524_p7 = pnand %p522_p6, %p519_p5 }
 0x4a8   :  { %527 = shalt.err (!%p524_p7)
}
 0x4a9   :  { %391 = dma.vmem_to_hbm [thread:$0]  %s389_s5, 256, %s706_s8, [#allocation3]  }
 0x4aa   :  { %528 = dma.done.wait [#allocation3], 256  }
 0x4ab   :  { %529 = vsyncadd [#allocation3], 4294967040 }
 0x4ac   :  { %395 = vsyncpa [#allocation3], 1 }

</bundles_post_ra>
